<compile_context>
chip_gen: v7x
topology: tpu7x:2x2x1
jax: 0.10.0
libtpu: 0.0.40
codegen_flags: <defaults>
</compile_context>

<pallas_src>
import functools

import jax
import jax.numpy as jnp
from jax.experimental import pallas as pl
from jax.experimental.pallas import tpu as pltpu


def _gem_kernel(p_ref, x_ref, o_ref, *, eps, n_total):
    """One (row-tile, N-tile) step of GeM pooling.

    p_ref: (1,)  f32 in SMEM      scalar exponent p
    x_ref: (TR, TN, C)            input slab, channels last (lane dim)
    o_ref: (TR, C) f32            pooled output; doubles as the accumulator
                                  (resident across the N grid axis)
    """
    n_idx = pl.program_id(1)
    p = p_ref[0]

    xc = jnp.maximum(x_ref[...].astype(jnp.float32), eps)   # clamp(min=eps)
    xp = jnp.exp(p * jnp.log(xc))                            # x ** p  (EUP)
    partial = jnp.sum(xp, axis=1)                            # reduce over N tile

    @pl.when(n_idx == 0)
    def _():
        o_ref[...] = partial                                 # init (no zero-fill)

    @pl.when(n_idx != 0)
    def _():
        o_ref[...] += partial                                # accumulate

    @pl.when(n_idx == pl.num_programs(1) - 1)
    def _():
        mean = o_ref[...] * (1.0 / n_total)                  # adaptive_avg_pool1d
        o_ref[...] = jnp.exp(jnp.log(mean) * (1.0 / p)).astype(o_ref.dtype)


def _pick_tile(total, target, align):
    """Largest t <= target dividing `total` with t % align == 0 (or t == total)."""
    for t in range(min(total, max(target, 1)), 0, -1):
        if total % t:
            continue
        if t == total or t % align == 0:
            return t
    return total


@functools.partial(jax.jit, static_argnames=("eps",))
def gem_pallas(x, p, *, eps=1e-6):
    """x: (batch, B, N, C), p: (1,) float32.  Returns (batch, B, C) float32."""
    batch, Bd, N, C = x.shape
    R = batch * Bd

    # Row tile: big to amortize per-step overhead; 8-sublane aligned (or == R).
    # N tile: keep the x block around <= 4 MiB so double-buffered input plus
    # the resident output tile fits the default scoped-VMEM budget on
    # v5e (16 MiB) / v6e (32 MiB) / v7x (32 MiB scoped, 64 MiB physical).
    tr = _pick_tile(R, 512, 8)
    max_tn = max(1, (4 << 20) // max(1, tr * C * 4))
    tn = _pick_tile(N, max_tn, 8)

    x2 = x.reshape(R, N, C)                      # free contiguous HBM view
    p1 = p.reshape(1).astype(jnp.float32)        # scalar -> SMEM

    kernel = functools.partial(_gem_kernel, eps=float(eps), n_total=float(N))

    out2 = pl.pallas_call(
        kernel,
        out_shape=jax.ShapeDtypeStruct((R, C), jnp.float32),
        grid_spec=pltpu.PrefetchScalarGridSpec(
            num_scalar_prefetch=0,
            grid=(R // tr, N // tn),
            in_specs=[
                pl.BlockSpec(memory_space=pltpu.MemorySpace.SMEM),   # p (scalar)
                pl.BlockSpec((tr, tn, C), lambda r, n: (r, n, 0)),   # x slab
            ],
            out_specs=pl.BlockSpec((tr, C), lambda r, n: (r, 0)),    # resident acc
        ),
        compiler_params=pltpu.CompilerParams(
            dimension_semantics=("parallel", "arbitrary")),
    )(p1, x2)

    return out2.reshape(batch, Bd, C)


def gem_reference(x, p, eps=1e-6):
    """Pure-JAX reference mirroring the PyTorch GeM forward."""
    pv = p.reshape(())
    xc = jnp.maximum(x, eps)                 # clamp(min=eps)
    xp = xc ** pv                            # pow(p)
    m = jnp.mean(xp, axis=2)                 # adaptive_avg_pool1d over N -> (batch, B, C)
    return m ** (1.0 / pv)                   # pow(1/p)


if __name__ == "__main__":
    # Small shapes consistent with the module: forward takes [batch, B, N, C].
    batch, Bd, N, C = 2, 4, 16, 32

    key = jax.random.PRNGKey(0)
    kx, _ = jax.random.split(key)
    x = jax.random.normal(kx, (batch, Bd, N, C), jnp.float32)
    p = jnp.ones((1,), jnp.float32) * 3.0    # default learnable exponent p=3

    out = gem_pallas(x, p)
    out = jax.block_until_ready(out)

    ref = gem_reference(x, p)
    assert out.shape == (batch, Bd, C), out.shape
    assert jnp.allclose(out, ref, atol=1e-4, rtol=1e-4), float(jnp.max(jnp.abs(out - ref)))

    print("KERNEL_OK")
</pallas_src>

<mosaic_0001>
module attributes {stable_mosaic.version = 11 : i64} {
  func.func @_gem_kernel(%arg0: i32, %arg1: i32, %arg2: memref<1xf32, #tpu.memory_space<smem>>, %arg3: memref<8x16x32xf32, #tpu.memory_space<vmem>>, %arg4: memref<8x32xf32, #tpu.memory_space<vmem>>) attributes {dimension_semantics = [#tpu.dimension_semantics<parallel>, #tpu.dimension_semantics<arbitrary>], iteration_bounds = array<i64: 1, 1>, scalar_prefetch = 0 : i64, scratch_operands = 0 : i64, tpu.core_type = #tpu.core_type<tc>, window_params = [{transform_indices = @transform_0, window_bounds = array<i64: 1>}, {transform_indices = @transform_1, window_bounds = array<i64: 8, 16, 32>}, {transform_indices = @transform_2, window_bounds = array<i64: 8, 32>}]} {
    %c0 = arith.constant 0 : index
    %0 = memref.load %arg2[%c0] : memref<1xf32, #tpu.memory_space<smem>>
    %c0_0 = arith.constant 0 : index
    %c0_1 = arith.constant 0 : index
    %c0_2 = arith.constant 0 : index
    %1 = vector.load %arg3[%c0_0, %c0_1, %c0_2] : memref<8x16x32xf32, #tpu.memory_space<vmem>>, vector<8x16x32xf32>
    %cst = arith.constant 9.99999997E-7 : f32
    %2 = vector.broadcast %cst : f32 to vector<8x16x32xf32>
    %3 = arith.maximumf %1, %2 : vector<8x16x32xf32>
    %4 = math.log %3 : vector<8x16x32xf32>
    %5 = vector.broadcast %0 : f32 to vector<8x16x32xf32>
    %6 = arith.mulf %5, %4 : vector<8x16x32xf32>
    %7 = math.exp %6 : vector<8x16x32xf32>
    %cst_3 = arith.constant dense<0.000000e+00> : vector<8x32xf32>
    %8 = vector.multi_reduction <add>, %7, %cst_3 [1] : vector<8x16x32xf32> to vector<8x32xf32>
    %c0_i32 = arith.constant 0 : i32
    %9 = arith.cmpi eq, %arg1, %c0_i32 : i32
    %10 = arith.extui %9 : i1 to i32
    %c0_i32_4 = arith.constant 0 : i32
    %11 = arith.cmpi ne, %10, %c0_i32_4 : i32
    scf.if %11 {
      %c0_9 = arith.constant 0 : index
      %c0_10 = arith.constant 0 : index
      %18 = vector.load %arg4[%c0_9, %c0_10] : memref<8x32xf32, #tpu.memory_space<vmem>>, vector<8x32xf32>
      tpu.vector_store %arg4[%c0_9, %c0_10], %8 {strides = array<i32>} : memref<8x32xf32, #tpu.memory_space<vmem>>, vector<8x32xf32>,
    } else {
    }
    %c0_i32_5 = arith.constant 0 : i32
    %12 = arith.cmpi ne, %arg1, %c0_i32_5 : i32
    %13 = arith.extui %12 : i1 to i32
    %c0_i32_6 = arith.constant 0 : i32
    %14 = arith.cmpi ne, %13, %c0_i32_6 : i32
    scf.if %14 {
      %c0_9 = arith.constant 0 : index
      %c0_10 = arith.constant 0 : index
      %18 = vector.load %arg4[%c0_9, %c0_10] : memref<8x32xf32, #tpu.memory_space<vmem>>, vector<8x32xf32>
      %19 = arith.addf %18, %8 : vector<8x32xf32>
      %c0_11 = arith.constant 0 : index
      %c0_12 = arith.constant 0 : index
      %20 = vector.load %arg4[%c0_11, %c0_12] : memref<8x32xf32, #tpu.memory_space<vmem>>, vector<8x32xf32>
      tpu.vector_store %arg4[%c0_11, %c0_12], %19 {strides = array<i32>} : memref<8x32xf32, #tpu.memory_space<vmem>>, vector<8x32xf32>,
    } else {
    }
    %c0_i32_7 = arith.constant 0 : i32
    %15 = arith.cmpi eq, %arg1, %c0_i32_7 : i32
    %16 = arith.extui %15 : i1 to i32
    %c0_i32_8 = arith.constant 0 : i32
    %17 = arith.cmpi ne, %16, %c0_i32_8 : i32
    scf.if %17 {
      %c0_9 = arith.constant 0 : index
      %c0_10 = arith.constant 0 : index
      %18 = vector.load %arg4[%c0_9, %c0_10] : memref<8x32xf32, #tpu.memory_space<vmem>>, vector<8x32xf32>
      %cst_11 = arith.constant 6.250000e-02 : f32
      %19 = vector.broadcast %cst_11 : f32 to vector<8x32xf32>
      %20 = arith.mulf %18, %19 : vector<8x32xf32>
      %21 = math.log %20 : vector<8x32xf32>
      %cst_12 = arith.constant 1.000000e+00 : f32
      %22 = arith.divf %cst_12, %0 : f32
      %23 = vector.broadcast %22 : f32 to vector<8x32xf32>
      %24 = arith.mulf %21, %23 : vector<8x32xf32>
      %25 = math.exp %24 : vector<8x32xf32>
      %c0_13 = arith.constant 0 : index
      %c0_14 = arith.constant 0 : index
      %26 = vector.load %arg4[%c0_13, %c0_14] : memref<8x32xf32, #tpu.memory_space<vmem>>, vector<8x32xf32>
      tpu.vector_store %arg4[%c0_13, %c0_14], %25 {strides = array<i32>} : memref<8x32xf32, #tpu.memory_space<vmem>>, vector<8x32xf32>,
    } else {
    }
    return
  }
  func.func @transform_0(%arg0: i32, %arg1: i32) -> i32 {
    %c0_i32 = arith.constant 0 : i32
    %c0_i32_0 = arith.constant 0 : i32
    return %c0_i32 : i32
  }
  func.func @transform_1(%arg0: i32, %arg1: i32) -> (i32, i32, i32) {
    %c0_i32 = arith.constant 0 : i32
    %c0_i32_0 = arith.constant 0 : i32
    return %arg0, %arg1, %c0_i32 : i32, i32, i32
  }
  func.func @transform_2(%arg0: i32, %arg1: i32) -> (i32, i32) {
    %c0_i32 = arith.constant 0 : i32
    %c0_i32_0 = arith.constant 0 : i32
    return %arg0, %c0_i32 : i32, i32
  }
}

</mosaic_0001>

<bundles_post_ra>
// kernel: gem_pallas.1
= control target key start
LH: loop header
LB: loop body
LE: loop exit
PB: predicated region body
PF: predicated region fallthrough
CT: control target
= control target key end

     0   :  { %8 = vsyncpa [#allocation4], 0  ;;  %s511_s0 = inlined_call_operand.<no memory space> [shape: f32[1], index: 0, kind: input, shape index: {}]   ;;  %s512_s1 = inlined_call_operand.hbm [shape: f32[8,16,32], index: 1, kind: input, shape index: {}]   ;;  %s513_s2 = inlined_call_operand.hbm [shape: f32[8,32], index: 2, kind: output, shape index: {}]  }
   0x1   :  { %9 = vsyncpa [#allocation5], 0  ;;  %s426_s9 = smov [#allocation3]   ;;  %s378_s13 = scalar_lea.hbm %s512_s1, 2048 }
   0x2   :  { %s17_s10 = sshll.u32 %s426_s9, 4  ;;  %p379_p0 = scmp.ne.s32.totalorder %s512_s1, %s378_s13  ;;  %s18_s10 = int_to_ptr.vmem [resolvable:$true] %s17_s10 }
   0x3   :  { %p382_p1 = scmp.lt.u32.totalorder %s378_s13, %s512_s1 }
   0x5   :  { %p384_p2 = pnand %p382_p1, %p379_p0 }
   0x7   :  { %387 = shalt.err (!%p384_p2)
}
   0x8   :  { %s388_s18 = scalar_lea.vmem %s18_s10, 2048  ;;  %p393_p4 = scmp.lt.s32.totalorder %s18_s10, %s18_s10 }
   0x9   :  { %p389_p3 = scmp.ne.s32.totalorder %s18_s10, %s388_s18  ;;  %p394_p5 = scmp.lt.s32.totalorder %s388_s18, %s388_s18 }
   0xb   :  { %p395_p6 = por %p394_p5, %p393_p4 }
   0xd   :  { %p396_p7 = pnand %p395_p6, %p389_p3 }
   0xf   :  { %399 = shalt.err (!%p396_p7)
}
  0x10   :  { %s427_s19 = smov 128   ;;  %s428_s20 = smov 8  }
  0x11   :  { %23 = dma.hbm_to_vmem [thread:$0]  %s512_s1, 2048, %s18_s10, [#allocation4], %s427_s19, %s427_s19, %s428_s20  }
  0x12   :  { %422 = dma.done.wait [#allocation4], 2048  }
  0x13   :  { %423 = vsyncadd [#allocation4], 4294965248  ;;  %v460_v0 = vstv %s511_s0  ;;  %v28_v1 = vld [vmem:[#allocation3] sm:$0xff]  ;;  %v29_v2 = vld [vmem:[#allocation3 + $0x8] sm:$0xff]  ;;  %vm141_vm0 = vcmask 261120   ;;  %vm226_vm1 = vcmask 1041409  }
  0x14   :  { %308 = vrcp.f32 %v460_v0  ;;  %v30_v3 = vld [vmem:[#allocation3 + $0x10] sm:$0xff]  ;;  %v31_v4 = vld [vmem:[#allocation3 + $0x18] sm:$0xff]  ;;  %v44_v5 = vmax.f32 %v28_v1, 1e-06  ;;  %v32_v6 = vld [vmem:[#allocation3 + $0x20] sm:$0xff]  ;;  %vm228_vm2 = vcmask 1042434  }
  0x15   :  { %v33_v7 = vld [vmem:[#allocation3 + $0x28] sm:$0xff]  ;;  %v45_v8 = vmax.f32 %v29_v2, 1e-06  ;;  %v34_v9 = vld [vmem:[#allocation3 + $0x30] sm:$0xff]  ;;  %v35_v10 = vld [vmem:[#allocation3 + $0x38] sm:$0xff]  ;;  %vm230_vm3 = vcmask 1043459  }
  0x16   :  { %v46_v11 = vmax.f32 %v30_v3, 1e-06  ;;  %310 = vlog2.f32 %v44_v5  ;;  %v36_v13 = vld [vmem:[#allocation3 + $0x40] sm:$0xff]  ;;  %v47_v14 = vmax.f32 %v31_v4, 1e-06  ;;  %v37_v15 = vld [vmem:[#allocation3 + $0x48] sm:$0xff] }
  0x17   :  { %312 = vlog2.f32 %v45_v8  ;;  %v48_v16 = vmax.f32 %v32_v6, 1e-06  ;;  %v49_v17 = vmax.f32 %v33_v7, 1e-06  ;;  %v38_v18 = vld [vmem:[#allocation3 + $0x50] sm:$0xff]  ;;  %v39_v21 = vld [vmem:[#allocation3 + $0x58] sm:$0xff] }
  0x18   :  { %314 = vlog2.f32 %v46_v11  ;;  %v50_v19 = vmax.f32 %v34_v9, 1e-06  ;;  %v51_v20 = vmax.f32 %v35_v10, 1e-06  ;;  %v52_v22 = vmax.f32 %v36_v13, 1e-06 }
  0x19   :  { %316 = vlog2.f32 %v47_v14  ;;  %v40_v23 = vld [vmem:[#allocation3 + $0x60] sm:$0xff]  ;;  %v53_v24 = vmax.f32 %v37_v15, 1e-06  ;;  %v41_v25 = vld [vmem:[#allocation3 + $0x68] sm:$0xff]  ;;  %v54_v26 = vmax.f32 %v38_v18, 1e-06 }
  0x1a   :  { %318 = vlog2.f32 %v48_v16  ;;  %v42_v27 = vld [vmem:[#allocation3 + $0x70] sm:$0xff]  ;;  %v55_v28 = vmax.f32 %v39_v21, 1e-06  ;;  %v43_v29 = vld [vmem:[#allocation3 + $0x78] sm:$0xff]  ;;  %v56_v30 = vmax.f32 %v40_v23, 1e-06 }
  0x1b   :  { %320 = vlog2.f32 %v49_v17  ;;  %v57_v31 = vmax.f32 %v41_v25, 1e-06  ;;  %v58_v33 = vmax.f32 %v42_v27, 1e-06  ;;  %v59_v35 = vmax.f32 %v43_v29, 1e-06 }
  0x1c   :  { %322 = vlog2.f32 %v50_v19  ;;  %vm232_vm4 = vcmask 1044484   ;;  %vm234_vm5 = vcmask 1045509   ;;  %vm236_vm6 = vcmask 1046534   ;;  %s429_s1 = smov [#allocation6]  }
  0x1d   :  { %324 = vlog2.f32 %v51_v20  ;;  %vm238_vm7 = vcmask 1047559   ;;  %s293_s25 = sshll.u32 %s429_s1, 4  ;;  %s294_s25 = int_to_ptr.vmem [resolvable:$true] %s293_s25 }
  0x1e   :  { %v309_v12 = vpop.eup %308  ;;  %326 = vlog2.f32 %v52_v22  ;;  %s400_s26 = scalar_lea.vmem %s294_s25, 128  ;;  %p405_p9 = scmp.lt.s32.totalorder %s294_s25, %s294_s25 }
  0x1f   :  { %302 = vpush %v309_v12  ;;  %328 = vlog2.f32 %v53_v24  ;;  %p401_p8 = scmp.ne.s32.totalorder %s294_s25, %s400_s26  ;;  %p406_p10 = scmp.lt.s32.totalorder %s400_s26, %s400_s26 }
  0x20   :  { %v311_v32 = vpop.eup %310  ;;  %330 = vlog2.f32 %v54_v26 }
  0x21   :  { %v313_v34 = vpop.eup %312  ;;  %v61_v36 = vmul.f32 0.6931472, %v311_v32  ;;  %332 = vlog2.f32 %v55_v28  ;;  %p407_p11 = por %p406_p10, %p405_p9 }
  0x22   :  { %v315_v37 = vpop.eup %314  ;;  %v63_v38 = vmul.f32 0.6931472, %v313_v34  ;;  %334 = vlog2.f32 %v56_v30 }
  0x23   :  { %v317_v39 = vpop.eup %316  ;;  %v65_v40 = vmul.f32 0.6931472, %v315_v37  ;;  %336 = vlog2.f32 %v57_v31  ;;  %v93_v41 = vmul.f32 %v460_v0, %v61_v36  ;;  %p408_p12 = pnand %p407_p11, %p401_p8 }
  0x24   :  { %v319_v42 = vpop.eup %318  ;;  %v67_v43 = vmul.f32 0.6931472, %v317_v39  ;;  %338 = vlog2.f32 %v58_v33  ;;  %v94_v44 = vmul.f32 %v460_v0, %v63_v38 }
  0x25   :  { %v321_v45 = vpop.eup %320  ;;  %v69_v46 = vmul.f32 0.6931472, %v319_v42  ;;  %340 = vlog2.f32 %v59_v35  ;;  %v95_v47 = vmul.f32 %v460_v0, %v65_v40  ;;  %v109_v48 = vmul.f32 1.442695, %v93_v41 }
  0x26   :  { %v323_v49 = vpop.eup %322  ;;  %v71_v50 = vmul.f32 0.6931472, %v321_v45  ;;  %v96_v51 = vmul.f32 %v460_v0, %v67_v43  ;;  %v111_v52 = vmul.f32 1.442695, %v94_v44 }
  0x27   :  { %v325_v53 = vpop.eup %324  ;;  %v73_v54 = vmul.f32 0.6931472, %v323_v49  ;;  %v97_v55 = vmul.f32 %v460_v0, %v69_v46  ;;  %342 = vpow2.f32 %v109_v48  ;;  %v113_v56 = vmul.f32 1.442695, %v95_v47 }
  0x28   :  { %v327_v57 = vpop.eup %326  ;;  %v75_v58 = vmul.f32 0.6931472, %v325_v53  ;;  %v98_v59 = vmul.f32 %v460_v0, %v71_v50  ;;  %344 = vpow2.f32 %v111_v52  ;;  %v115_v60 = vmul.f32 1.442695, %v96_v51 }
  0x29   :  { %v329_v61 = vpop.eup %328  ;;  %v77_v62 = vmul.f32 0.6931472, %v327_v57  ;;  %v99_v63 = vmul.f32 %v460_v0, %v73_v54  ;;  %346 = vpow2.f32 %v113_v56  ;;  %v117_v1 = vmul.f32 1.442695, %v97_v55 }
  0x2a   :  { %v331_v2 = vpop.eup %330  ;;  %v79_v3 = vmul.f32 0.6931472, %v329_v61  ;;  %v100_v4 = vmul.f32 %v460_v0, %v75_v58  ;;  %348 = vpow2.f32 %v115_v60  ;;  %v119_v5 = vmul.f32 1.442695, %v98_v59 }
  0x2b   :  { %v333_v6 = vpop.eup %332  ;;  %v81_v7 = vmul.f32 0.6931472, %v331_v2  ;;  %v101_v8 = vmul.f32 %v460_v0, %v77_v62  ;;  %350 = vpow2.f32 %v117_v1  ;;  %v121_v9 = vmul.f32 1.442695, %v99_v63 }
  0x2c   :  { %v335_v10 = vpop.eup %334  ;;  %v83_v11 = vmul.f32 0.6931472, %v333_v6  ;;  %v102_v12 = vmul.f32 %v460_v0, %v79_v3  ;;  %352 = vpow2.f32 %v119_v5  ;;  %v123_v13 = vmul.f32 1.442695, %v100_v4 }
  0x2d   :  { %v337_v14 = vpop.eup %336  ;;  %v85_v15 = vmul.f32 0.6931472, %v335_v10  ;;  %v103_v16 = vmul.f32 %v460_v0, %v81_v7  ;;  %354 = vpow2.f32 %v121_v9  ;;  %v125_v17 = vmul.f32 1.442695, %v101_v8 }
  0x2e   :  { %v339_v18 = vpop.eup %338  ;;  %v87_v19 = vmul.f32 0.6931472, %v337_v14  ;;  %v104_v20 = vmul.f32 %v460_v0, %v83_v11  ;;  %356 = vpow2.f32 %v123_v13  ;;  %v127_v21 = vmul.f32 1.442695, %v102_v12 }
  0x2f   :  { %v341_v22 = vpop.eup %340  ;;  %v89_v23 = vmul.f32 0.6931472, %v339_v18  ;;  %v105_v24 = vmul.f32 %v460_v0, %v85_v15  ;;  %358 = vpow2.f32 %v125_v17  ;;  %v129_v25 = vmul.f32 1.442695, %v103_v16 }
  0x30   :  { %v91_v26 = vmul.f32 0.6931472, %v341_v22  ;;  %v106_v27 = vmul.f32 %v460_v0, %v87_v19  ;;  %360 = vpow2.f32 %v127_v21  ;;  %v131_v28 = vmul.f32 1.442695, %v104_v20 }
  0x31   :  { %v343_v29 = vpop.eup %342  ;;  %v107_v30 = vmul.f32 %v460_v0, %v89_v23  ;;  %362 = vpow2.f32 %v129_v25  ;;  %v133_v31 = vmul.f32 1.442695, %v105_v24 }
  0x32   :  { %v345_v32 = vpop.eup %344  ;;  %v108_v33 = vmul.f32 %v460_v0, %v91_v26  ;;  %364 = vpow2.f32 %v131_v28  ;;  %v135_v34 = vmul.f32 1.442695, %v106_v27  ;;  %v142_v35 = vsel %vm141_vm0, %v343_v29, 0.0 }
  0x33   :  { %v347_v36 = vpop.eup %346  ;;  %366 = vpow2.f32 %v133_v31  ;;  %v137_v37 = vmul.f32 1.442695, %v107_v30  ;;  %v143_v38 = vsel %vm141_vm0, %v345_v32, 0.0 }
  0x34   :  { %v349_v39 = vpop.eup %348  ;;  %368 = vpow2.f32 %v135_v34  ;;  %v139_v40 = vmul.f32 1.442695, %v108_v33  ;;  %v144_v41 = vadd.f32 %v143_v38, %v142_v35  ;;  %v151_v42 = vsel %vm141_vm0, %v347_v36, 0.0 }
  0x35   :  { %v351_v43 = vpop.eup %350  ;;  %370 = vpow2.f32 %v137_v37  ;;  %v152_v44 = vsel %vm141_vm0, %v349_v39, 0.0 }
  0x36   :  { %v353_v0 = vpop.eup %352  ;;  %372 = vpow2.f32 %v139_v40  ;;  %v145_v45 = vrot.slane %v144_v41, 4  ;;  %v153_v46 = vadd.f32 %v152_v44, %v151_v42  ;;  %v160_v47 = vsel %vm141_vm0, %v351_v43, 0.0 }
  0x37   :  { %v355_v48 = vpop.eup %354  ;;  %v161_v49 = vsel %vm141_vm0, %v353_v0, 0.0 }
  0x38   :  { %v357_v50 = vpop.eup %356  ;;  %v146_v51 = vadd.f32 %v145_v45, %v144_v41  ;;  %v154_v52 = vrot.slane %v153_v46, 4  ;;  %v162_v53 = vadd.f32 %v161_v49, %v160_v47  ;;  %v169_v54 = vsel %vm141_vm0, %v355_v48, 0.0 }
  0x39   :  { %v359_v55 = vpop.eup %358  ;;  %v170_v56 = vsel %vm141_vm0, %v357_v50, 0.0 }
  0x3a   :  { %v361_v57 = vpop.eup %360  ;;  %v147_v58 = vrot.slane %v146_v51, 2  ;;  %v155_v59 = vadd.f32 %v154_v52, %v153_v46  ;;  %v163_v60 = vrot.slane %v162_v53, 4  ;;  %v171_v61 = vadd.f32 %v170_v56, %v169_v54 }
  0x3b   :  { %v363_v62 = vpop.eup %362  ;;  %v178_v63 = vsel %vm141_vm0, %v359_v55, 0.0  ;;  %v179_v1 = vsel %vm141_vm0, %v361_v57, 0.0 }
  0x3c   :  { %v365_v2 = vpop.eup %364  ;;  %v148_v3 = vadd.f32 %v147_v58, %v146_v51  ;;  %v156_v4 = vrot.slane %v155_v59, 2  ;;  %v164_v5 = vadd.f32 %v163_v60, %v162_v53  ;;  %v172_v6 = vrot.slane %v171_v61, 4 }
  0x3d   :  { %v367_v7 = vpop.eup %366  ;;  %v180_v8 = vadd.f32 %v179_v1, %v178_v63  ;;  %v187_v9 = vsel %vm141_vm0, %v363_v62, 0.0  ;;  %v188_v10 = vsel %vm141_vm0, %v365_v2, 0.0 }
  0x3e   :  { %v369_v11 = vpop.eup %368  ;;  %v149_v12 = vrot.slane %v148_v3, 1  ;;  %v157_v13 = vadd.f32 %v156_v4, %v155_v59  ;;  %v165_v14 = vrot.slane %v164_v5, 2  ;;  %v173_v15 = vadd.f32 %v172_v6, %v171_v61 }
  0x3f   :  { %v371_v16 = vpop.eup %370  ;;  %v181_v17 = vrot.slane %v180_v8, 4  ;;  %v189_v18 = vadd.f32 %v188_v10, %v187_v9  ;;  %v196_v19 = vsel %vm141_vm0, %v367_v7, 0.0  ;;  %v197_v20 = vsel %vm141_vm0, %v369_v11, 0.0 }
  0x40   :  { %v373_v21 = vpop.eup %372  ;;  %v150_v22 = vadd.f32 %v149_v12, %v148_v3  ;;  %v158_v23 = vrot.slane %v157_v13, 1  ;;  %v166_v24 = vadd.f32 %v165_v14, %v164_v5  ;;  %v174_v25 = vrot.slane %v173_v15, 2 }
  0x41   :  { %v182_v26 = vadd.f32 %v181_v17, %v180_v8  ;;  %v190_v27 = vrot.slane %v189_v18, 4  ;;  %v198_v28 = vadd.f32 %v197_v20, %v196_v19  ;;  %v205_v29 = vsel %vm141_vm0, %v371_v16, 0.0 }
  0x42   :  { %v159_v30 = vadd.f32 %v158_v23, %v157_v13  ;;  %v167_v31 = vrot.slane %v166_v24, 1  ;;  %v175_v32 = vadd.f32 %v174_v25, %v173_v15  ;;  %v206_v33 = vsel %vm141_vm0, %v373_v21, 0.0 }
  0x43   :  { %v183_v34 = vrot.slane %v182_v26, 2  ;;  %v191_v35 = vadd.f32 %v190_v27, %v189_v18  ;;  %v199_v36 = vrot.slane %v198_v28, 4  ;;  %v207_v37 = vadd.f32 %v206_v33, %v205_v29 }
  0x44   :  { %v168_v38 = vadd.f32 %v167_v31, %v166_v24  ;;  %v176_v39 = vrot.slane %v175_v32, 1  ;;  %v227_v40 = vsel %vm226_vm1, %v159_v30, %v150_v22 }
  0x45   :  { %v184_v41 = vadd.f32 %v183_v34, %v182_v26  ;;  %v192_v42 = vrot.slane %v191_v35, 2  ;;  %v200_v43 = vadd.f32 %v199_v36, %v198_v28  ;;  %v208_v44 = vrot.slane %v207_v37, 4 }
  0x46   :  { %v177_v0 = vadd.f32 %v176_v39, %v175_v32  ;;  %v229_v45 = vsel %vm228_vm2, %v168_v38, %v227_v40 }
  0x47   :  { %v185_v46 = vrot.slane %v184_v41, 1  ;;  %v193_v47 = vadd.f32 %v192_v42, %v191_v35  ;;  %v201_v48 = vrot.slane %v200_v43, 2  ;;  %v209_v49 = vadd.f32 %v208_v44, %v207_v37 }
  0x48   :  { %v231_v50 = vsel %vm230_vm3, %v177_v0, %v229_v45 }
  0x49   :  { %v186_v51 = vadd.f32 %v185_v46, %v184_v41  ;;  %v194_v52 = vrot.slane %v193_v47, 1  ;;  %v202_v53 = vadd.f32 %v201_v48, %v200_v43  ;;  %v210_v54 = vrot.slane %v209_v49, 2 }
  0x4b   :  { %v195_v55 = vadd.f32 %v194_v52, %v193_v47  ;;  %v203_v56 = vrot.slane %v202_v53, 1  ;;  %v211_v57 = vadd.f32 %v210_v54, %v209_v49  ;;  %v233_v58 = vsel %vm232_vm4, %v186_v51, %v231_v50 }
  0x4d   :  { %v204_v59 = vadd.f32 %v203_v56, %v202_v53  ;;  %v212_v60 = vrot.slane %v211_v57, 1  ;;  %v235_v61 = vsel %vm234_vm5, %v195_v55, %v233_v58 }
  0x4f   :  { %v213_v62 = vadd.f32 %v212_v60, %v211_v57  ;;  %v237_v63 = vsel %vm236_vm6, %v204_v59, %v235_v61 }
  0x50   :  { %s303_s0 = spop %302 }
  0x51   :  { %v239_v1 = vsel %vm238_vm7, %v213_v62, %v237_v63  ;;  %v282_v5 = vstv %s303_s0 }
  0x52   :  { %241 = vst.msk [vmem:[#allocation6] sm:$0xff] %vm141_vm0, %v239_v1 }
  0x59   :  { %v275_v2 = vld [vmem:[#allocation6] sm:$0xff] }
  0x5a   :  { %v276_v3 = vmul.f32 0.0625, %v275_v2 }
  0x5c   :  { %374 = vlog2.f32 %v276_v3 }
  0x66   :  { %v375_v4 = vpop.eup %374 }
  0x67   :  { %v278_v6 = vmul.f32 0.6931472, %v375_v4 }
  0x69   :  { %v283_v7 = vmul.f32 %v282_v5, %v278_v6 }
  0x6b   :  { %v284_v8 = vmul.f32 1.442695, %v283_v7 }
  0x6d   :  { %376 = vpow2.f32 %v284_v8 }
  0x77   :  { %v377_v9 = vpop.eup %376 }
  0x78   :  { %286 = vst.msk [vmem:[#allocation6] sm:$0xff] %vm141_vm0, %v377_v9 }
  0x79   :  { %411 = shalt.err (!%p408_p12)
}
  0x7a   :  { %s412_s29 = scalar_lea.hbm %s513_s2, 128 }
  0x7b   :  { %p413_p13 = scmp.ne.s32.totalorder %s513_s2, %s412_s29  ;;  %p416_p0 = scmp.lt.u32.totalorder %s412_s29, %s513_s2 }
  0x7d   :  { %p418_p1 = pnand %p416_p0, %p413_p13 }
  0x7f   :  { %421 = shalt.err (!%p418_p1)
}
  0x80   :  { %296 = dma.vmem_to_hbm [thread:$0]  %s294_s25, 128, %s513_s2, [#allocation5]  }
  0x81   :  { %424 = dma.done.wait [#allocation5], 128  }
  0x82   :  { %425 = vsyncadd [#allocation5], 4294967168 }
  0x83   :  { %300 = vsyncpa [#allocation4], 1 }
  0x84   :  { %301 = vsyncpa [#allocation5], 1 }

</bundles_post_ra>
